<compile_context>
chip_gen: v7x
topology: tpu7x:2x2x1
jax: 0.10.0
libtpu: 0.0.40
codegen_flags: <defaults>
</compile_context>

<pallas_src>
import functools

import jax
import jax.numpy as jnp
from jax.experimental import pallas as pl
from jax.experimental.pallas import tpu as pltpu

LOG_STD_MIN = -20.0
LOG_STD_MAX = 2.0


def _round_up(x, m):
    return ((x + m - 1) // m) * m


# ---------------------------------------------------------------------------
# Kernel
# ---------------------------------------------------------------------------
def _policy_kernel(state_ref,
                   w1_ref, b1_ref,
                   w2_ref, b2_ref,
                   wh_ref, bh_ref,
                   out_ref,
                   *, action_dim):
    """One batch tile: fc1+relu, fc2+relu, fused (mean | log_std) head."""
    mm_dtype = w1_ref.dtype  # matmul operand dtype (bf16 by default, or f32)

    x = state_ref[...].astype(mm_dtype)

    # fc1 + relu (MXU accumulates in f32, epilogue in f32)
    h1 = jnp.dot(x, w1_ref[...], preferred_element_type=jnp.float32)
    h1 = jnp.maximum(h1 + b1_ref[...], 0.0)

    # fc2 + relu
    h2 = jnp.dot(h1.astype(mm_dtype), w2_ref[...],
                 preferred_element_type=jnp.float32)
    h2 = jnp.maximum(h2 + b2_ref[...], 0.0)

    # fused heads: cols [0, A) = mean, cols [A, 2A) = log_std, rest = padding
    heads = jnp.dot(h2.astype(mm_dtype), wh_ref[...],
                    preferred_element_type=jnp.float32) + bh_ref[...]

    # clip+exp only affects the log_std half; select by lane index so we
    # avoid lane-slicing/concat (XLU work).  exp rides the idle EUP slot.
    lane = jax.lax.broadcasted_iota(jnp.int32, heads.shape, 1)
    std_half = jnp.exp(jnp.clip(heads, LOG_STD_MIN, LOG_STD_MAX))
    out_ref[...] = jnp.where(lane >= action_dim, std_half, heads)


# ---------------------------------------------------------------------------
# Parameter packing (do ONCE per policy update, outside the rollout loop)
# ---------------------------------------------------------------------------
def pack_policy_params(params, *, matmul_dtype=jnp.bfloat16):
    """Pre-pack / pre-cast params for policy_forward.

    params: dict with w1 (S,H), b1 (1,H), w2 (H,H), b2 (1,H),
            wm (H,A), bm (1,A), ws (H,A), bs (1,A)  (all f32, (in,out) layout)
    Returns a dict of kernel-ready arrays (weights in `matmul_dtype`, biases
    f32, heads fused and zero-padded to a lane-dense multiple of 128 columns)
    plus the static 'action_dim'.
    """
    H = params["w1"].shape[1]
    A = params["wm"].shape[1]
    HP = _round_up(2 * A, 128)  # lane-dense fused-head width

    wh = jnp.concatenate([params["wm"], params["ws"]], axis=1)
    bh = jnp.concatenate([params["bm"], params["bs"]], axis=1)
    if HP != 2 * A:
        wh = jnp.pad(wh, ((0, 0), (0, HP - 2 * A)))
        bh = jnp.pad(bh, ((0, 0), (0, HP - 2 * A)))

    return {
        "w1": params["w1"].astype(matmul_dtype),
        "b1": params["b1"].astype(jnp.float32),
        "w2": params["w2"].astype(matmul_dtype),
        "b2": params["b2"].astype(jnp.float32),
        "wh": wh.astype(matmul_dtype),
        "bh": bh.astype(jnp.float32),
        "action_dim": A,          # static metadata (Python int)
    }


# ---------------------------------------------------------------------------
# Forward wrapper
# ---------------------------------------------------------------------------
def policy_forward(state, packed, *, block_m=1024, min_tiles=2):
    """PolicyNetwork forward pass in a single Pallas TPU kernel.

    state:  (B, state_dim) float32
    packed: output of pack_policy_params()
    returns: (mean, std), each (B, action_dim) float32
    """
    B, S = state.shape
    H = packed["w1"].shape[1]
    HP = packed["wh"].shape[1]
    A = packed["action_dim"]

    # Balanced batch tiling: at least `min_tiles` grid steps (v7x megacore),
    # tiles sized ceil(B / n_tiles) rounded to 8 -> <= 7 padded rows per tile.
    n_tiles = max(pl.cdiv(B, block_m), min_tiles)
    BM = _round_up(pl.cdiv(B, n_tiles), 8)
    B_pad = _round_up(B, BM)
    grid = (B_pad // BM,)

    state_p = state
    if B_pad != B:
        state_p = jnp.pad(state, ((0, B_pad - B), (0, 0)))

    itemsize = jnp.dtype(packed["w1"].dtype).itemsize
    cost = pl.CostEstimate(
        flops=2 * B_pad * (S * H + H * H + H * HP),
        transcendentals=B_pad * HP,
        bytes_accessed=(4 * B_pad * S                        # state (f32)
                        + itemsize * (S * H + H * H + H * HP)  # weights
                        + 4 * (2 * H + HP)                   # biases
                        + 4 * B_pad * HP),                   # fused output
    )

    # Explicit VMEM budget: double-buffered streamed tiles + resident weights
    # + f32/bf16 intermediates, with headroom.  Keeps v5e's 16 MiB default
    # scoped limit from ever bounding BM; capped well under v7x's 64 MiB.
    vmem_bytes = (2 * BM * S * 4                              # state tiles
                  + 2 * BM * HP * 4                           # output tiles
                  + 2 * itemsize * (S * H + H * H + H * HP)   # weights
                  + 2 * 4 * (2 * H + HP)                      # biases
                  + 8 * BM * H * 4)                           # h1/h2 + casts
    vmem_limit = int(min(max(vmem_bytes, 16 << 20), 56 << 20))

    const2d = lambda i: (0, 0)  # weights/biases: same block every grid step

    out = pl.pallas_call(
        functools.partial(_policy_kernel, action_dim=A),
        out_shape=jax.ShapeDtypeStruct((B_pad, HP), jnp.float32),
        grid=grid,
        in_specs=[
            pl.BlockSpec((BM, S), lambda i: (i, 0)),   # state tile (streamed)
            pl.BlockSpec((S, H), const2d),             # w1 (resident)
            pl.BlockSpec((1, H), const2d),             # b1
            pl.BlockSpec((H, H), const2d),             # w2
            pl.BlockSpec((1, H), const2d),             # b2
            pl.BlockSpec((H, HP), const2d),            # fused head weight
            pl.BlockSpec((1, HP), const2d),            # fused head bias
        ],
        out_specs=pl.BlockSpec((BM, HP), lambda i: (i, 0)),
        compiler_params=pltpu.CompilerParams(
            dimension_semantics=("parallel",),         # v7x: shard over 2 TCs
            vmem_limit_bytes=vmem_limit),
        cost_estimate=cost,
    )(state_p, packed["w1"], packed["b1"], packed["w2"], packed["b2"],
      packed["wh"], packed["bh"])

    mean = out[:B, :A]
    std = out[:B, A:2 * A]
    return mean, std


# ---------------------------------------------------------------------------
# Init + reference (match the PyTorch module)
# ---------------------------------------------------------------------------
def _orthogonal(key, shape, gain):
    """Deterministic orthogonal init (matches nn.init.orthogonal_ semantics)."""
    rows, cols = shape
    n = max(rows, cols)
    a = jax.random.normal(key, (n, n), dtype=jnp.float32)
    q, r = jnp.linalg.qr(a)
    q = q * jnp.sign(jnp.diag(r))[None, :]
    return gain * q[:rows, :cols]


def init_policy_params(key, state_dim, action_dim, hidden_dim=256):
    gain = jnp.sqrt(2.0)
    k1, k2, k3, k4 = jax.random.split(key, 4)
    # PyTorch Linear weight is (out, in); we store (in, out) = transpose.
    return {
        "w1": _orthogonal(k1, (hidden_dim, state_dim), gain).T,
        "b1": jnp.zeros((1, hidden_dim), jnp.float32),
        "w2": _orthogonal(k2, (hidden_dim, hidden_dim), gain).T,
        "b2": jnp.zeros((1, hidden_dim), jnp.float32),
        "wm": _orthogonal(k3, (action_dim, hidden_dim), gain).T,
        "bm": jnp.zeros((1, action_dim), jnp.float32),
        "ws": _orthogonal(k4, (action_dim, hidden_dim), gain).T,
        "bs": jnp.zeros((1, action_dim), jnp.float32),
    }


def _reference_forward(state, p):
    h1 = jnp.maximum(state @ p["w1"] + p["b1"], 0.0)
    h2 = jnp.maximum(h1 @ p["w2"] + p["b2"], 0.0)
    mean = h2 @ p["wm"] + p["bm"]
    log_std = jnp.clip(h2 @ p["ws"] + p["bs"], LOG_STD_MIN, LOG_STD_MAX)
    return mean, jnp.exp(log_std)


if __name__ == "__main__":
    # Small shapes consistent with the module: state_dim=16, action_dim=8,
    # hidden_dim=32, batch=8.  (At these demo sizes the kernel is pure launch
    # overhead; the tiling pays off at hidden_dim=256 and large batches.)
    batch, state_dim, action_dim, hidden_dim = 8, 16, 8, 32

    key = jax.random.PRNGKey(0)
    k_params, k_state = jax.random.split(key)
    params = init_policy_params(k_params, state_dim, action_dim, hidden_dim)
    state = jax.random.normal(k_state, (batch, state_dim), dtype=jnp.float32)

    ref_mean, ref_std = _reference_forward(state, params)

    # f32 matmul-operand path: must match the plain-JAX reference tightly.
    packed_f32 = pack_policy_params(params, matmul_dtype=jnp.float32)
    mean, std = policy_forward(state, packed_f32)
    jax.block_until_ready((mean, std))
    assert mean.shape == (batch, action_dim) and std.shape == (batch, action_dim)
    assert jnp.allclose(mean, ref_mean, atol=1e-5, rtol=1e-5)
    assert jnp.allclose(std, ref_std, atol=1e-5, rtol=1e-5)

    # Default bf16 matmul-operand path (perf-recommended): loose tolerance.
    packed_bf16 = pack_policy_params(params)  # bf16 is the default
    mean_bf, std_bf = policy_forward(state, packed_bf16)
    jax.block_until_ready((mean_bf, std_bf))
    assert jnp.allclose(mean_bf, ref_mean, atol=1e-1, rtol=1e-1)
    assert jnp.allclose(std_bf, ref_std, atol=1e-1, rtol=1e-1)

    print("KERNEL_OK")
</pallas_src>

<mosaic_0001>
module attributes {stable_mosaic.version = 11 : i64} {
  func.func @_policy_kernel(%arg0: i32, %arg1: memref<8x16xf32, #tpu.memory_space<vmem>>, %arg2: memref<16x32xf32, #tpu.memory_space<vmem>>, %arg3: memref<1x32xf32, #tpu.memory_space<vmem>>, %arg4: memref<32x32xf32, #tpu.memory_space<vmem>>, %arg5: memref<1x32xf32, #tpu.memory_space<vmem>>, %arg6: memref<32x128xf32, #tpu.memory_space<vmem>>, %arg7: memref<1x128xf32, #tpu.memory_space<vmem>>, %arg8: memref<8x128xf32, #tpu.memory_space<vmem>>) attributes {dimension_semantics = [#tpu.dimension_semantics<parallel>], iteration_bounds = array<i64: 1>, scalar_prefetch = 0 : i64, scratch_operands = 0 : i64, tpu.core_type = #tpu.core_type<tc>, window_params = [{transform_indices = @transform_0, window_bounds = array<i64: 8, 16>}, {pipeline_mode = #tpu.pipeline_mode<synchronous>, transform_indices = @transform_1, window_bounds = array<i64: 16, 32>}, {pipeline_mode = #tpu.pipeline_mode<synchronous>, transform_indices = @transform_2, window_bounds = array<i64: 1, 32>}, {pipeline_mode = #tpu.pipeline_mode<synchronous>, transform_indices = @transform_3, window_bounds = array<i64: 32, 32>}, {pipeline_mode = #tpu.pipeline_mode<synchronous>, transform_indices = @transform_4, window_bounds = array<i64: 1, 32>}, {pipeline_mode = #tpu.pipeline_mode<synchronous>, transform_indices = @transform_5, window_bounds = array<i64: 32, 128>}, {pipeline_mode = #tpu.pipeline_mode<synchronous>, transform_indices = @transform_6, window_bounds = array<i64: 1, 128>}, {transform_indices = @transform_7, window_bounds = array<i64: 8, 128>}]} {
    %c0 = arith.constant 0 : index
    %c0_0 = arith.constant 0 : index
    %0 = vector.load %arg1[%c0, %c0_0] : memref<8x16xf32, #tpu.memory_space<vmem>>, vector<8x16xf32>
    %c0_1 = arith.constant 0 : index
    %c0_2 = arith.constant 0 : index
    %1 = vector.load %arg2[%c0_1, %c0_2] : memref<16x32xf32, #tpu.memory_space<vmem>>, vector<16x32xf32>
    %cst = arith.constant dense<0.000000e+00> : vector<8x32xf32>
    %2 = tpu.matmul %0, %1, %cst {dimension_numbers = #tpu.dot_dimension_numbers<[1], [0], [0], [1], [0, 0, 1, 1], [], []>} : vector<8x16xf32>, vector<16x32xf32>, vector<8x32xf32> -> vector<8x32xf32>
    %c0_3 = arith.constant 0 : index
    %c0_4 = arith.constant 0 : index
    %3 = vector.load %arg3[%c0_3, %c0_4] : memref<1x32xf32, #tpu.memory_space<vmem>>, vector<1x32xf32>
    %4 = vector.broadcast %3 : vector<1x32xf32> to vector<8x32xf32>
    %5 = arith.addf %2, %4 : vector<8x32xf32>
    %cst_5 = arith.constant 0.000000e+00 : f32
    %6 = vector.broadcast %cst_5 : f32 to vector<8x32xf32>
    %7 = arith.maximumf %5, %6 : vector<8x32xf32>
    %c0_6 = arith.constant 0 : index
    %c0_7 = arith.constant 0 : index
    %8 = vector.load %arg4[%c0_6, %c0_7] : memref<32x32xf32, #tpu.memory_space<vmem>>, vector<32x32xf32>
    %cst_8 = arith.constant dense<0.000000e+00> : vector<8x32xf32>
    %9 = tpu.matmul %7, %8, %cst_8 {dimension_numbers = #tpu.dot_dimension_numbers<[1], [0], [0], [1], [0, 0, 1, 1], [], []>} : vector<8x32xf32>, vector<32x32xf32>, vector<8x32xf32> -> vector<8x32xf32>
    %c0_9 = arith.constant 0 : index
    %c0_10 = arith.constant 0 : index
    %10 = vector.load %arg5[%c0_9, %c0_10] : memref<1x32xf32, #tpu.memory_space<vmem>>, vector<1x32xf32>
    %11 = vector.broadcast %10 : vector<1x32xf32> to vector<8x32xf32>
    %12 = arith.addf %9, %11 : vector<8x32xf32>
    %cst_11 = arith.constant 0.000000e+00 : f32
    %13 = vector.broadcast %cst_11 : f32 to vector<8x32xf32>
    %14 = arith.maximumf %12, %13 : vector<8x32xf32>
    %c0_12 = arith.constant 0 : index
    %c0_13 = arith.constant 0 : index
    %15 = vector.load %arg6[%c0_12, %c0_13] : memref<32x128xf32, #tpu.memory_space<vmem>>, vector<32x128xf32>
    %cst_14 = arith.constant dense<0.000000e+00> : vector<8x128xf32>
    %16 = tpu.matmul %14, %15, %cst_14 {dimension_numbers = #tpu.dot_dimension_numbers<[1], [0], [0], [1], [0, 0, 1, 1], [], []>} : vector<8x32xf32>, vector<32x128xf32>, vector<8x128xf32> -> vector<8x128xf32>
    %c0_15 = arith.constant 0 : index
    %c0_16 = arith.constant 0 : index
    %17 = vector.load %arg7[%c0_15, %c0_16] : memref<1x128xf32, #tpu.memory_space<vmem>>, vector<1x128xf32>
    %18 = vector.broadcast %17 : vector<1x128xf32> to vector<8x128xf32>
    %19 = arith.addf %16, %18 : vector<8x128xf32>
    %20 = tpu.iota {dimensions = array<i32: 1>} : vector<8x128xi32>
    %cst_17 = arith.constant -2.000000e+01 : f32
    %cst_18 = arith.constant 2.000000e+00 : f32
    %21 = vector.broadcast %cst_17 : f32 to vector<8x128xf32>
    %22 = arith.maximumf %21, %19 : vector<8x128xf32>
    %23 = vector.broadcast %cst_18 : f32 to vector<8x128xf32>
    %24 = arith.minimumf %23, %22 : vector<8x128xf32>
    %25 = math.exp %24 : vector<8x128xf32>
    %c8_i32 = arith.constant 8 : i32
    %26 = vector.broadcast %c8_i32 : i32 to vector<8x128xi32>
    %27 = arith.cmpi sge, %20, %26 : vector<8x128xi32>
    %28 = arith.select %27, %25, %19 : vector<8x128xi1>, vector<8x128xf32>
    %c0_19 = arith.constant 0 : index
    %c0_20 = arith.constant 0 : index
    %29 = vector.load %arg8[%c0_19, %c0_20] : memref<8x128xf32, #tpu.memory_space<vmem>>, vector<8x128xf32>
    tpu.vector_store %arg8[%c0_19, %c0_20], %28 {strides = array<i32>} : memref<8x128xf32, #tpu.memory_space<vmem>>, vector<8x128xf32>,
    return
  }
  func.func @transform_0(%arg0: i32) -> (i32, i32) {
    %c0_i32 = arith.constant 0 : i32
    %c0_i32_0 = arith.constant 0 : i32
    return %arg0, %c0_i32 : i32, i32
  }
  func.func @transform_1(%arg0: i32) -> (i32, i32) {
    %c0_i32 = arith.constant 0 : i32
    %c0_i32_0 = arith.constant 0 : i32
    %c0_i32_1 = arith.constant 0 : i32
    return %c0_i32, %c0_i32_0 : i32, i32
  }
  func.func @transform_2(%arg0: i32) -> (i32, i32) {
    %c0_i32 = arith.constant 0 : i32
    %c0_i32_0 = arith.constant 0 : i32
    %c0_i32_1 = arith.constant 0 : i32
    return %c0_i32, %c0_i32_0 : i32, i32
  }
  func.func @transform_3(%arg0: i32) -> (i32, i32) {
    %c0_i32 = arith.constant 0 : i32
    %c0_i32_0 = arith.constant 0 : i32
    %c0_i32_1 = arith.constant 0 : i32
    return %c0_i32, %c0_i32_0 : i32, i32
  }
  func.func @transform_4(%arg0: i32) -> (i32, i32) {
    %c0_i32 = arith.constant 0 : i32
    %c0_i32_0 = arith.constant 0 : i32
    %c0_i32_1 = arith.constant 0 : i32
    return %c0_i32, %c0_i32_0 : i32, i32
  }
  func.func @transform_5(%arg0: i32) -> (i32, i32) {
    %c0_i32 = arith.constant 0 : i32
    %c0_i32_0 = arith.constant 0 : i32
    %c0_i32_1 = arith.constant 0 : i32
    return %c0_i32, %c0_i32_0 : i32, i32
  }
  func.func @transform_6(%arg0: i32) -> (i32, i32) {
    %c0_i32 = arith.constant 0 : i32
    %c0_i32_0 = arith.constant 0 : i32
    %c0_i32_1 = arith.constant 0 : i32
    return %c0_i32, %c0_i32_0 : i32, i32
  }
  func.func @transform_7(%arg0: i32) -> (i32, i32) {
    %c0_i32 = arith.constant 0 : i32
    %c0_i32_0 = arith.constant 0 : i32
    return %arg0, %c0_i32 : i32, i32
  }
}

</mosaic_0001>

<bundles_post_ra>
// kernel: tpu_custom_call.1
= control target key start
LH: loop header
LB: loop body
LE: loop exit
PB: predicated region body
PF: predicated region fallthrough
CT: control target
= control target key end

     0   :  { %12 = vsyncpa [#allocation3], 0  ;;  %s685_s0 = inlined_call_operand.hbm [shape: f32[8,16], index: 0, kind: input, shape index: {}]   ;;  %s686_s1 = inlined_call_operand.hbm [shape: f32[16,32], index: 1, kind: input, shape index: {}]   ;;  %s687_s2 = inlined_call_operand.vmem [shape: f32[1,32], index: 2, kind: input, shape index: {}]   ;;  %s688_s3 = inlined_call_operand.hbm [shape: f32[32,32], index: 3, kind: input, shape index: {}]   ;;  %s689_s4 = inlined_call_operand.vmem [shape: f32[1,32], index: 4, kind: input, shape index: {}]   ;;  %s690_s5 = inlined_call_operand.hbm [shape: f32[32,128], index: 5, kind: input, shape index: {}]   ;;  %s691_s6 = inlined_call_operand.vmem [shape: f32[1,128], index: 6, kind: input, shape index: {}]   ;;  %s692_s7 = inlined_call_operand.hbm [shape: f32[8,128], index: 7, kind: output, shape index: {}]  }
   0x1   :  { %13 = vsyncpa [#allocation6], 0 }
   0x2   :  { %14 = vsyncpa [#allocation9], 0 }
   0x3   :  { %15 = vsyncpa [#allocation4], 0  ;;  %s554_s24 = smov [#allocation5]   ;;  %s436_s28 = scalar_lea.hbm %s686_s1, 256 }
   0x4   :  { %s31_s25 = sshll.u32 %s554_s24, 4  ;;  %p437_p0 = scmp.ne.s32.totalorder %s686_s1, %s436_s28  ;;  %s32_s25 = int_to_ptr.vmem [resolvable:$true] %s31_s25 }
   0x5   :  { %p440_p1 = scmp.lt.u32.totalorder %s436_s28, %s686_s1 }
   0x7   :  { %p442_p2 = pnand %p440_p1, %p437_p0 }
   0x9   :  { %445 = shalt.err (!%p442_p2)
}
   0xa   :  { %s446_s10 = scalar_lea.vmem %s32_s25, 256  ;;  %p451_p4 = scmp.lt.s32.totalorder %s32_s25, %s32_s25 }
   0xb   :  { %p447_p3 = scmp.ne.s32.totalorder %s32_s25, %s446_s10  ;;  %p452_p5 = scmp.lt.s32.totalorder %s446_s10, %s446_s10 }
   0xd   :  { %p453_p6 = por %p452_p5, %p451_p4 }
   0xf   :  { %p454_p7 = pnand %p453_p6, %p447_p3 }
  0x11   :  { %457 = shalt.err (!%p454_p7)
}
  0x12   :  { %s555_s11 = smov 128   ;;  %s556_s12 = smov 8  }
  0x13   :  { %37 = dma.hbm_to_vmem [thread:$0]  %s686_s1, 256, %s32_s25, [#allocation6], %s555_s11, %s555_s11, %s556_s12  }
  0x14   :  { %s557_s15 = smov [#allocation2]   ;;  %s558_s17 = smov [#allocation7]  }
  0x15   :  { %s22_s16 = sshll.u32 %s557_s15, 4  ;;  %s45_s18 = sshll.u32 %s558_s17, 4  ;;  %s23_s16 = int_to_ptr.vmem [resolvable:$true] %s22_s16  ;;  %s46_s18 = int_to_ptr.vmem [resolvable:$true] %s45_s18 }
  0x16   :  { %s458_s21 = scalar_lea.hbm %s685_s0, 128 }
  0x17   :  { %p459_p8 = scmp.ne.s32.totalorder %s685_s0, %s458_s21  ;;  %p462_p9 = scmp.lt.u32.totalorder %s458_s21, %s685_s0 }
  0x19   :  { %p464_p10 = pnand %p462_p9, %p459_p8 }
  0x1b   :  { %467 = shalt.err (!%p464_p10)
}
  0x1c   :  { %s468_s1 = scalar_lea.vmem %s23_s16, 128  ;;  %p473_p12 = scmp.lt.s32.totalorder %s23_s16, %s23_s16 }
  0x1d   :  { %p469_p11 = scmp.ne.s32.totalorder %s23_s16, %s468_s1  ;;  %p474_p13 = scmp.lt.s32.totalorder %s468_s1, %s468_s1 }
  0x1f   :  { %p475_p0 = por %p474_p13, %p473_p12 }
  0x21   :  { %p476_p1 = pnand %p475_p0, %p469_p11 }
  0x23   :  { %479 = shalt.err (!%p476_p1)
}
  0x24   :  { %25 = dma.hbm_to_vmem [thread:$0]  %s685_s0, 128, %s23_s16, [#allocation3]  }
  0x25   :  { %s480_s30 = scalar_lea.hbm %s688_s3, 512 }
  0x26   :  { %p481_p2 = scmp.ne.s32.totalorder %s688_s3, %s480_s30  ;;  %p484_p3 = scmp.lt.u32.totalorder %s480_s30, %s688_s3 }
  0x28   :  { %p486_p4 = pnand %p484_p3, %p481_p2 }
  0x2a   :  { %489 = shalt.err (!%p486_p4)
}
  0x2b   :  { %s490_s14 = scalar_lea.vmem %s46_s18, 512  ;;  %p495_p6 = scmp.lt.s32.totalorder %s46_s18, %s46_s18 }
  0x2c   :  { %p491_p5 = scmp.ne.s32.totalorder %s46_s18, %s490_s14  ;;  %p496_p7 = scmp.lt.s32.totalorder %s490_s14, %s490_s14 }
  0x2e   :  { %p497_p8 = por %p496_p7, %p495_p6 }
  0x30   :  { %p498_p9 = pnand %p497_p8, %p491_p5 }
  0x32   :  { %501 = shalt.err (!%p498_p9)
}
  0x33   :  { %51 = dma.hbm_to_vmem [thread:$0]  %s688_s3, 512, %s46_s18, [#allocation6], %s555_s11, %s555_s11, %s556_s12  }
  0x34   :  { %s559_s16 = smov [#allocation8]   ;;  %s502_s21 = scalar_lea.hbm %s690_s5, 512 }
  0x35   :  { %s59_s17 = sshll.u32 %s559_s16, 4  ;;  %p503_p10 = scmp.ne.s32.totalorder %s690_s5, %s502_s21  ;;  %s60_s17 = int_to_ptr.vmem [resolvable:$true] %s59_s17 }
  0x36   :  { %p506_p11 = scmp.lt.u32.totalorder %s502_s21, %s690_s5 }
  0x38   :  { %p508_p12 = pnand %p506_p11, %p503_p10 }
  0x3a   :  { %511 = shalt.err (!%p508_p12)
}
  0x3b   :  { %s512_s1 = scalar_lea.vmem %s60_s17, 512  ;;  %p517_p0 = scmp.lt.s32.totalorder %s60_s17, %s60_s17 }
  0x3c   :  { %p513_p13 = scmp.ne.s32.totalorder %s60_s17, %s512_s1  ;;  %p518_p1 = scmp.lt.s32.totalorder %s512_s1, %s512_s1 }
  0x3e   :  { %p519_p2 = por %p518_p1, %p517_p0 }
  0x40   :  { %p520_p3 = pnand %p519_p2, %p513_p13 }
  0x42   :  { %523 = shalt.err (!%p520_p3)
}
  0x43   :  { %65 = dma.hbm_to_vmem [thread:$0]  %s690_s5, 512, %s60_s17, [#allocation9], %s555_s11, %s555_s11, %s556_s12  }
  0x44   :  { %546 = dma.done.wait [#allocation3], 128  }
  0x45   :  { %547 = vsyncadd [#allocation3], 4294967168 }
  0x46   :  { %548 = dma.done.wait [#allocation6], 768  }
  0x47   :  { %549 = vsyncadd [#allocation6], 4294966528 }
  0x48   :  { %550 = dma.done.wait [#allocation9], 512  }
  0x49   :  { %551 = vsyncadd [#allocation9], 4294966784  ;;  %v560_v0 = vmov 0.0|0.0   ;;  %vm561_vm0 = vmmov 0   ;;  %v562_v1 = vmov 0.0   ;;  %v81_v2 = vld [vmem:[#allocation5] sm:$0xff]  ;;  %v335_v35 = vlaneseq }
  0x4a   :  { %409 = vmatprep.subr.bf16.mxu0 %v560_v0  ;;  %384 = vmatprep.mubr.msk.f32.mxu0 %vm561_vm0, %v562_v1  ;;  %v82_v3 = vld [vmem:[#allocation5 + $0x8] sm:$0xff]  ;;  %v165_v5 = vld [vmem:[#allocation7] sm:$0xff]  ;;  %v166_v6 = vld [vmem:[#allocation7 + $0x8] sm:$0xff]  ;;  %vm90_vm1 = vcmask 130048   ;;  %vm176_vm2 = vcmask 261120   ;;  %s563_s28 = smov [#allocation10]  }
  0x4b   :  { %412 = vmatprep.subr.bf16.mxu1 %v560_v0  ;;  %395 = vmatprep.mubr.msk.f32.mxu1 %vm561_vm0, %v562_v1  ;;  %v410_v4 = vpack.c.bf16 %v82_v3, %v81_v2  ;;  %v413_v7 = vpack.c.bf16 %v166_v6, %v165_v5  ;;  %v80_v8 = vld [vmem:[#allocation2] sm:$0xff]  ;;  %v167_v9 = vld [vmem:[#allocation7 + $0x10] sm:$0xff]  ;;  %v168_v10 = vld [vmem:[#allocation7 + $0x18] sm:$0xff]  ;;  %v336_v36 = vand.u32 127, %v335_v35 }
  0x4c   :  { %v416_v11 = vpack.c.bf16 %v168_v10, %v167_v9  ;;  %v251_v12 = vld [vmem:[#allocation8] sm:$0xff]  ;;  %v252_v13 = vld [vmem:[#allocation8 + $0x8] sm:$0xff]  ;;  %v253_v20 = vld [vmem:[#allocation8 + $0x10] sm:$0xff] }
  0x4d   :  { %411 = vmatpush3.bf16.msra.mxu0 %v410_v4  ;;  %414 = vmatpush3.bf16.msra.mxu1 %v413_v7  ;;  %v419_v14 = vpack.c.bf16 %v252_v13, %v251_v12  ;;  %v361_v15 = vld [vmem:[%s687_s2] ss:$0 sm:$0xff]  ;;  %v254_v21 = vld [vmem:[#allocation8 + $0x18] sm:$0xff]  ;;  %vm341_vm3 = vcmp.ge.s32.totalorder %v336_v36, 8 }
  0x4e   :  { %418 = vmatprep.subr.bf16.mxu0 %v560_v0  ;;  %415 = vmatprep.subr.bf16.mxu1 %v560_v0  ;;  %v422_v22 = vpack.c.bf16 %v254_v21, %v253_v20  ;;  %v363_v23 = vld [vmem:[%s689_s4] ss:$0 sm:$0xff]  ;;  %s350_s4 = sshll.u32 %s563_s28, 4  ;;  %s351_s4 = int_to_ptr.vmem [resolvable:$true] %s350_s4 }
  0x4f   :  { %v365_v28 = vld [vmem:[%s691_s6] ss:$0 sm:$0xff]  ;;  %s524_s29 = scalar_lea.vmem %s351_s4, 128  ;;  %p529_p5 = scmp.lt.s32.totalorder %s351_s4, %s351_s4 }
  0x50   :  { %385 = vmatmul.mubr.msk.f32.vlgmr.msra.gmra.mrb[0].mxu0 %vm90_vm1, %v80_v8  ;;  %p525_p4 = scmp.ne.s32.totalorder %s351_s4, %s524_s29  ;;  %p530_p6 = scmp.lt.s32.totalorder %s524_s29, %s524_s29 }
  0x51   :  { %406 = vmatprep.mubr.msk.f32.mxu0 %vm561_vm0, %v562_v1  ;;  %417 = vmatpush3.bf16.msra.mxu1 %v416_v11 }
  0x52   :  { %420 = vmatpush3.bf16.msra.mxu0 %v419_v14  ;;  %p531_p7 = por %p530_p6, %p529_p5 }
  0x53   :  { %421 = vmatprep.subr.bf16.mxu0 %v560_v0 }
  0x54   :  { %p532_p8 = pnand %p531_p7, %p525_p4 }
  0x56   :  { %423 = vmatpush3.bf16.msra.mxu0 %v422_v22 }
 0x123   :  { %v160_v16 = vpop.f32.mrb[0].mxu0 }
 0x124   :  { %v161_v17 = vadd.f32 %v361_v15, %v160_v16  ;;  %v386_v18 = vpop.f32.mrb[1].mxu0 }
 0x126   :  { %v164_v19 = vmax.f32 %v161_v17, 0.0 }
 0x128   :  { %396 = vmatmul.mubr.msk.f32.vlgmr.msra.gmra.mrb[0].mxu1 %vm176_vm2, %v164_v19 }
 0x1fb   :  { %v246_v24 = vpop.f32.mrb[0].mxu1 }
 0x1fc   :  { %v247_v25 = vadd.f32 %v363_v23, %v246_v24  ;;  %v397_v26 = vpop.f32.mrb[1].mxu1 }
 0x1fe   :  { %v250_v27 = vmax.f32 %v247_v25, 0.0 }
 0x200   :  { %407 = vmatmul.mubr.msk.f32.vlgmr.msra.gmra.mrb[2].mxu0 %vm176_vm2, %v250_v27 }
 0x2d3   :  { %v331_v29 = vpop.f32.mrb[2].mxu0 }
 0x2d4   :  { %v332_v30 = vadd.f32 %v365_v28, %v331_v29  ;;  %v408_v31 = vpop.f32.mrb[3].mxu0 }
 0x2d6   :  { %v337_v32 = vmax.f32 %v332_v30, -20.0 }
 0x2d8   :  { %v338_v33 = vmin.f32 %v337_v32, 2.0 }
 0x2da   :  { %v339_v34 = vmul.f32 1.442695, %v338_v33 }
 0x2dc   :  { %434 = vpow2.f32 %v339_v34 }
 0x2e6   :  { %v435_v37 = vpop.eup %434 }
 0x2e7   :  { %v342_v38 = vsel %vm341_vm3, %v435_v37, %v332_v30 }
 0x2e8   :  { %343 = vst [vmem:[#allocation10] sm:$0xff] %v342_v38 }
 0x2e9   :  { %535 = shalt.err (!%p532_p8)
}
 0x2ea   :  { %s536_s8 = scalar_lea.hbm %s692_s7, 128 }
 0x2eb   :  { %p537_p9 = scmp.ne.s32.totalorder %s692_s7, %s536_s8  ;;  %p540_p10 = scmp.lt.u32.totalorder %s536_s8, %s692_s7 }
 0x2ed   :  { %p542_p11 = pnand %p540_p10, %p537_p9 }
 0x2ef   :  { %545 = shalt.err (!%p542_p11)
}
 0x2f0   :  { %353 = dma.vmem_to_hbm [thread:$0]  %s351_s4, 128, %s692_s7, [#allocation4]  }
 0x2f1   :  { %552 = dma.done.wait [#allocation4], 128  }
 0x2f2   :  { %553 = vsyncadd [#allocation4], 4294967168 }
 0x2f3   :  { %357 = vsyncpa [#allocation3], 1 }
 0x2f4   :  { %358 = vsyncpa [#allocation6], 1 }
 0x2f5   :  { %359 = vsyncpa [#allocation9], 1 }
 0x2f6   :  { %360 = vsyncpa [#allocation4], 1 }

</bundles_post_ra>
